<compile_context>
chip_gen: v7x
topology: tpu7x:2x2x1
jax: 0.10.0
libtpu: 0.0.40
codegen_flags: <defaults>
</compile_context>

<pallas_src>
import jax
import jax.numpy as jnp
from jax.experimental import pallas as pl
from jax.experimental.pallas import tpu as pltpu

LANE = 128
SUBLANE = 8


def _round_up(n, m):
    return ((n + m - 1) // m) * m


def densenet_kernel(x_ref,
                    w1_ref, b1_ref,
                    w2_ref, b2_ref,
                    w3_ref, b3_ref,
                    w4_ref, b4_ref,
                    out_ref):
    # x arrives as f32; cast to bf16 in-kernel (free VPU op) before the MXU.
    x = x_ref[...].astype(jnp.bfloat16)

    # dense1 + ReLU : [TB,S] @ [S,64] + [1,64]
    h = jnp.dot(x, w1_ref[...], preferred_element_type=jnp.float32) + b1_ref[...]
    h = jnp.maximum(h, 0.0)

    # dense2 + ReLU : [TB,64] @ [64,32] + [1,32]
    h = jnp.dot(h.astype(jnp.bfloat16), w2_ref[...],
                preferred_element_type=jnp.float32) + b2_ref[...]
    h = jnp.maximum(h, 0.0)

    # dense3 + ReLU : [TB,32] @ [32,8] + [1,8]
    h = jnp.dot(h.astype(jnp.bfloat16), w3_ref[...],
                preferred_element_type=jnp.float32) + b3_ref[...]
    h = jnp.maximum(h, 0.0)

    # out : [TB,8] @ [8,A_pad] + [1,A_pad]  (w4/b4 are lane-padded so the
    # matmul itself stays lane-dense), then store only the real A columns.
    y = jnp.dot(h.astype(jnp.bfloat16), w4_ref[...],
                preferred_element_type=jnp.float32) + b4_ref[...]

    a = out_ref.shape[1]
    out_ref[...] = y[:, :a].astype(out_ref.dtype)


def prepare_params(params):
    """One-time conversion to kernel-ready form (do this at init/train-state
    creation, NOT per forward call): bf16 [in,out] weights, f32 [1,out]
    biases; the output head (w4/b4) is zero-padded to 128 lanes so the last
    matmul is lane-dense."""
    A = params["w4"].shape[1]
    A_pad = _round_up(max(A, LANE), LANE)
    return {
        "w1": params["w1"].astype(jnp.bfloat16),
        "b1": params["b1"].astype(jnp.float32),
        "w2": params["w2"].astype(jnp.bfloat16),
        "b2": params["b2"].astype(jnp.float32),
        "w3": params["w3"].astype(jnp.bfloat16),
        "b3": params["b3"].astype(jnp.float32),
        "w4": jnp.pad(params["w4"].astype(jnp.bfloat16),
                      ((0, 0), (0, A_pad - A))),
        "b4": jnp.pad(params["b4"].astype(jnp.float32),
                      ((0, 0), (0, A_pad - A))),
    }


def _choose_tile(B, tile_b):
    """Pick the batch tile.  Big tiles amortize per-grid-step overhead; for
    mid/large batches we force >= 2 grid steps so v7x's second TensorCore is
    used; tile_b caps VMEM (v7x has only 64 MiB physical)."""
    tile_b = _round_up(max(tile_b, 16), 16)
    if B <= 16:
        TB = _round_up(max(B, 1), 16)
    else:
        TB = min(tile_b, _round_up(pl.cdiv(B, 2), 16))
    B_pad = _round_up(B, TB)
    return TB, B_pad


def densenet_forward(x, params, action_size=3, tile_b=4096):
    """x: [B, state_size] float32; params: output of prepare_params().

    Returns [B, action_size] float32 Q-values.
    """
    B, S = x.shape
    A = action_size
    A_pad = params["w4"].shape[1]
    assert A_pad >= A and A_pad % LANE == 0, "params must come from prepare_params"

    TB, B_pad = _choose_tile(B, tile_b)
    n_steps = B_pad // TB

    # Only batch padding happens in the wrapper (cast is done in-kernel).
    xp = x
    if B_pad != B:
        xp = jnp.pad(xp, ((0, B_pad - B), (0, 0)))

    w1, b1 = params["w1"], params["b1"]
    w2, b2 = params["w2"], params["b2"]
    w3, b3 = params["w3"], params["b3"]
    w4, b4 = params["w4"], params["b4"]

    # ---- BlockSpecs (built explicitly — no late-binding closure) ------------
    def batch_map(i):
        return (i, 0)

    def const_map(i):
        return (0, 0)

    in_specs = [
        pl.BlockSpec((TB, S), batch_map),
        pl.BlockSpec(w1.shape, const_map), pl.BlockSpec(b1.shape, const_map),
        pl.BlockSpec(w2.shape, const_map), pl.BlockSpec(b2.shape, const_map),
        pl.BlockSpec(w3.shape, const_map), pl.BlockSpec(b3.shape, const_map),
        pl.BlockSpec(w4.shape, const_map), pl.BlockSpec(b4.shape, const_map),
    ]
    out_spec = pl.BlockSpec((TB, A), batch_map)

    # ---- cost estimate for XLA's scheduler ----------------------------------
    weight_bytes = sum(int(a.size) * a.dtype.itemsize
                       for a in (w1, b1, w2, b2, w3, b3, w4, b4))
    flops = 2 * B_pad * (S * 64 + 64 * 32 + 32 * 8 + 8 * A_pad)
    bytes_accessed = B_pad * S * 4 + B_pad * A * 4 + weight_bytes

    out = pl.pallas_call(
        densenet_kernel,
        out_shape=jax.ShapeDtypeStruct((B_pad, A), jnp.float32),
        grid=(n_steps,),
        in_specs=in_specs,
        out_specs=out_spec,
        compiler_params=pltpu.CompilerParams(
            dimension_semantics=("parallel",),
            # TB=4096 with lane-padded f32 intermediates is ~20 MiB; the
            # v5e scoped default (16 MiB) is too small, 40 MiB leaves
            # headroom on v7x's 64 MiB physical VMEM.
            vmem_limit_bytes=40 * 1024 * 1024),
        cost_estimate=pl.CostEstimate(
            flops=flops, transcendentals=0, bytes_accessed=bytes_accessed),
    )(xp, w1, b1, w2, b2, w3, b3, w4, b4)

    if B_pad != B:
        out = out[:B]
    return out


def init_params(key, state_size, action_size=3, dtype=jnp.float32):
    """Deterministic init mimicking nn.Linear default (U[-1/sqrt(fan_in), +]).

    Weights stored as [in, out] (transposed vs PyTorch's [out, in])."""
    dims = [(state_size, 64), (64, 32), (32, 8), (8, action_size)]
    params = {}
    for i, (fan_in, fan_out) in enumerate(dims, start=1):
        key, kw, kb = jax.random.split(key, 3)
        bound = 1.0 / (fan_in ** 0.5)
        params[f"w{i}"] = jax.random.uniform(
            kw, (fan_in, fan_out), dtype, minval=-bound, maxval=bound)
        params[f"b{i}"] = jax.random.uniform(
            kb, (1, fan_out), dtype, minval=-bound, maxval=bound)
    return params


def densenet_reference(x, params):
    """Pure-JAX reference using the same precision scheme as the kernel
    (bf16 matmul inputs, f32 accumulation, f32 bias/ReLU/output)."""
    def dense(h, w, b):
        return jnp.dot(h.astype(jnp.bfloat16), w.astype(jnp.bfloat16),
                       preferred_element_type=jnp.float32) + b.astype(jnp.float32)

    h = jnp.maximum(dense(x, params["w1"], params["b1"]), 0.0)
    h = jnp.maximum(dense(h, params["w2"], params["b2"]), 0.0)
    h = jnp.maximum(dense(h, params["w3"], params["b3"]), 0.0)
    return dense(h, params["w4"], params["b4"])


if __name__ == "__main__":
    key = jax.random.PRNGKey(0)
    batch = 2
    state_size = 16
    action_size = 3

    key, kx, kp = jax.random.split(key, 3)
    x = jax.random.normal(kx, (batch, state_size), dtype=jnp.float32)
    raw_params = init_params(kp, state_size, action_size)

    # One-time weight cast / head padding (hoisted out of the forward path).
    params = prepare_params(raw_params)

    fwd = jax.jit(densenet_forward, static_argnames=("action_size", "tile_b"))
    out = fwd(x, params, action_size=action_size)
    out = jax.block_until_ready(out)

    ref = densenet_reference(x, raw_params)
    assert out.shape == (batch, action_size), out.shape
    assert jnp.allclose(out, ref, atol=1e-3, rtol=1e-3), "mismatch vs reference"

    # TODO(synk): at B~2 the call is launch/DMA-overhead bound — amortize by
    # batching many env states per call at the RL call site.

    print("KERNEL_OK")
</pallas_src>

<mosaic_0001>
module attributes {stable_mosaic.version = 11 : i64} {
  func.func @densenet_kernel(%arg0: i32, %arg1: memref<16x16xf32, #tpu.memory_space<vmem>>, %arg2: memref<16x64xbf16, #tpu.memory_space<vmem>>, %arg3: memref<1x64xf32, #tpu.memory_space<vmem>>, %arg4: memref<64x32xbf16, #tpu.memory_space<vmem>>, %arg5: memref<1x32xf32, #tpu.memory_space<vmem>>, %arg6: memref<32x8xbf16, #tpu.memory_space<vmem>>, %arg7: memref<1x8xf32, #tpu.memory_space<vmem>>, %arg8: memref<8x128xbf16, #tpu.memory_space<vmem>>, %arg9: memref<1x128xf32, #tpu.memory_space<vmem>>, %arg10: memref<16x3xf32, #tpu.memory_space<vmem>>) attributes {dimension_semantics = [#tpu.dimension_semantics<parallel>], iteration_bounds = array<i64: 1>, scalar_prefetch = 0 : i64, scratch_operands = 0 : i64, tpu.core_type = #tpu.core_type<tc>, window_params = [{transform_indices = @transform_0, window_bounds = array<i64: 16, 16>}, {pipeline_mode = #tpu.pipeline_mode<synchronous>, transform_indices = @transform_1, window_bounds = array<i64: 16, 64>}, {pipeline_mode = #tpu.pipeline_mode<synchronous>, transform_indices = @transform_2, window_bounds = array<i64: 1, 64>}, {pipeline_mode = #tpu.pipeline_mode<synchronous>, transform_indices = @transform_3, window_bounds = array<i64: 64, 32>}, {pipeline_mode = #tpu.pipeline_mode<synchronous>, transform_indices = @transform_4, window_bounds = array<i64: 1, 32>}, {pipeline_mode = #tpu.pipeline_mode<synchronous>, transform_indices = @transform_5, window_bounds = array<i64: 32, 8>}, {pipeline_mode = #tpu.pipeline_mode<synchronous>, transform_indices = @transform_6, window_bounds = array<i64: 1, 8>}, {pipeline_mode = #tpu.pipeline_mode<synchronous>, transform_indices = @transform_7, window_bounds = array<i64: 8, 128>}, {pipeline_mode = #tpu.pipeline_mode<synchronous>, transform_indices = @transform_8, window_bounds = array<i64: 1, 128>}, {transform_indices = @transform_9, window_bounds = array<i64: 16, 3>}]} {
    %c0 = arith.constant 0 : index
    %c0_0 = arith.constant 0 : index
    %0 = vector.load %arg1[%c0, %c0_0] : memref<16x16xf32, #tpu.memory_space<vmem>>, vector<16x16xf32>
    %1 = arith.truncf %0 : vector<16x16xf32> to vector<16x16xbf16>
    %c0_1 = arith.constant 0 : index
    %c0_2 = arith.constant 0 : index
    %2 = vector.load %arg2[%c0_1, %c0_2] : memref<16x64xbf16, #tpu.memory_space<vmem>>, vector<16x64xbf16>
    %cst = arith.constant dense<0.000000e+00> : vector<16x64xf32>
    %3 = tpu.matmul %1, %2, %cst {dimension_numbers = #tpu.dot_dimension_numbers<[1], [0], [0], [1], [0, 0, 1, 1], [], []>} : vector<16x16xbf16>, vector<16x64xbf16>, vector<16x64xf32> -> vector<16x64xf32>
    %c0_3 = arith.constant 0 : index
    %c0_4 = arith.constant 0 : index
    %4 = vector.load %arg3[%c0_3, %c0_4] : memref<1x64xf32, #tpu.memory_space<vmem>>, vector<1x64xf32>
    %5 = vector.broadcast %4 : vector<1x64xf32> to vector<16x64xf32>
    %6 = arith.addf %3, %5 : vector<16x64xf32>
    %cst_5 = arith.constant 0.000000e+00 : f32
    %7 = vector.broadcast %cst_5 : f32 to vector<16x64xf32>
    %8 = arith.maximumf %6, %7 : vector<16x64xf32>
    %9 = arith.truncf %8 : vector<16x64xf32> to vector<16x64xbf16>
    %c0_6 = arith.constant 0 : index
    %c0_7 = arith.constant 0 : index
    %10 = vector.load %arg4[%c0_6, %c0_7] : memref<64x32xbf16, #tpu.memory_space<vmem>>, vector<64x32xbf16>
    %cst_8 = arith.constant dense<0.000000e+00> : vector<16x32xf32>
    %11 = tpu.matmul %9, %10, %cst_8 {dimension_numbers = #tpu.dot_dimension_numbers<[1], [0], [0], [1], [0, 0, 1, 1], [], []>} : vector<16x64xbf16>, vector<64x32xbf16>, vector<16x32xf32> -> vector<16x32xf32>
    %c0_9 = arith.constant 0 : index
    %c0_10 = arith.constant 0 : index
    %12 = vector.load %arg5[%c0_9, %c0_10] : memref<1x32xf32, #tpu.memory_space<vmem>>, vector<1x32xf32>
    %13 = vector.broadcast %12 : vector<1x32xf32> to vector<16x32xf32>
    %14 = arith.addf %11, %13 : vector<16x32xf32>
    %cst_11 = arith.constant 0.000000e+00 : f32
    %15 = vector.broadcast %cst_11 : f32 to vector<16x32xf32>
    %16 = arith.maximumf %14, %15 : vector<16x32xf32>
    %17 = arith.truncf %16 : vector<16x32xf32> to vector<16x32xbf16>
    %c0_12 = arith.constant 0 : index
    %c0_13 = arith.constant 0 : index
    %18 = vector.load %arg6[%c0_12, %c0_13] : memref<32x8xbf16, #tpu.memory_space<vmem>>, vector<32x8xbf16>
    %cst_14 = arith.constant dense<0.000000e+00> : vector<16x8xf32>
    %19 = tpu.matmul %17, %18, %cst_14 {dimension_numbers = #tpu.dot_dimension_numbers<[1], [0], [0], [1], [0, 0, 1, 1], [], []>} : vector<16x32xbf16>, vector<32x8xbf16>, vector<16x8xf32> -> vector<16x8xf32>
    %c0_15 = arith.constant 0 : index
    %c0_16 = arith.constant 0 : index
    %20 = vector.load %arg7[%c0_15, %c0_16] : memref<1x8xf32, #tpu.memory_space<vmem>>, vector<1x8xf32>
    %21 = vector.broadcast %20 : vector<1x8xf32> to vector<16x8xf32>
    %22 = arith.addf %19, %21 : vector<16x8xf32>
    %cst_17 = arith.constant 0.000000e+00 : f32
    %23 = vector.broadcast %cst_17 : f32 to vector<16x8xf32>
    %24 = arith.maximumf %22, %23 : vector<16x8xf32>
    %25 = arith.truncf %24 : vector<16x8xf32> to vector<16x8xbf16>
    %c0_18 = arith.constant 0 : index
    %c0_19 = arith.constant 0 : index
    %26 = vector.load %arg8[%c0_18, %c0_19] : memref<8x128xbf16, #tpu.memory_space<vmem>>, vector<8x128xbf16>
    %cst_20 = arith.constant dense<0.000000e+00> : vector<16x128xf32>
    %27 = tpu.matmul %25, %26, %cst_20 {dimension_numbers = #tpu.dot_dimension_numbers<[1], [0], [0], [1], [0, 0, 1, 1], [], []>} : vector<16x8xbf16>, vector<8x128xbf16>, vector<16x128xf32> -> vector<16x128xf32>
    %c0_21 = arith.constant 0 : index
    %c0_22 = arith.constant 0 : index
    %28 = vector.load %arg9[%c0_21, %c0_22] : memref<1x128xf32, #tpu.memory_space<vmem>>, vector<1x128xf32>
    %29 = vector.broadcast %28 : vector<1x128xf32> to vector<16x128xf32>
    %30 = arith.addf %27, %29 : vector<16x128xf32>
    %31 = vector.extract_strided_slice %30 {offsets = [0, 0], sizes = [16, 3], strides = [1, 1]} : vector<16x128xf32> to vector<16x3xf32>
    %c0_23 = arith.constant 0 : index
    %c0_24 = arith.constant 0 : index
    %32 = vector.load %arg10[%c0_23, %c0_24] : memref<16x3xf32, #tpu.memory_space<vmem>>, vector<16x3xf32>
    tpu.vector_store %arg10[%c0_23, %c0_24], %31 {strides = array<i32>} : memref<16x3xf32, #tpu.memory_space<vmem>>, vector<16x3xf32>,
    return
  }
  func.func @transform_0(%arg0: i32) -> (i32, i32) {
    %c0_i32 = arith.constant 0 : i32
    %c0_i32_0 = arith.constant 0 : i32
    return %arg0, %c0_i32 : i32, i32
  }
  func.func @transform_1(%arg0: i32) -> (i32, i32) {
    %c0_i32 = arith.constant 0 : i32
    %c0_i32_0 = arith.constant 0 : i32
    %c0_i32_1 = arith.constant 0 : i32
    return %c0_i32, %c0_i32_0 : i32, i32
  }
  func.func @transform_2(%arg0: i32) -> (i32, i32) {
    %c0_i32 = arith.constant 0 : i32
    %c0_i32_0 = arith.constant 0 : i32
    %c0_i32_1 = arith.constant 0 : i32
    return %c0_i32, %c0_i32_0 : i32, i32
  }
  func.func @transform_3(%arg0: i32) -> (i32, i32) {
    %c0_i32 = arith.constant 0 : i32
    %c0_i32_0 = arith.constant 0 : i32
    %c0_i32_1 = arith.constant 0 : i32
    return %c0_i32, %c0_i32_0 : i32, i32
  }
  func.func @transform_4(%arg0: i32) -> (i32, i32) {
    %c0_i32 = arith.constant 0 : i32
    %c0_i32_0 = arith.constant 0 : i32
    %c0_i32_1 = arith.constant 0 : i32
    return %c0_i32, %c0_i32_0 : i32, i32
  }
  func.func @transform_5(%arg0: i32) -> (i32, i32) {
    %c0_i32 = arith.constant 0 : i32
    %c0_i32_0 = arith.constant 0 : i32
    %c0_i32_1 = arith.constant 0 : i32
    return %c0_i32, %c0_i32_0 : i32, i32
  }
  func.func @transform_6(%arg0: i32) -> (i32, i32) {
    %c0_i32 = arith.constant 0 : i32
    %c0_i32_0 = arith.constant 0 : i32
    %c0_i32_1 = arith.constant 0 : i32
    return %c0_i32, %c0_i32_0 : i32, i32
  }
  func.func @transform_7(%arg0: i32) -> (i32, i32) {
    %c0_i32 = arith.constant 0 : i32
    %c0_i32_0 = arith.constant 0 : i32
    %c0_i32_1 = arith.constant 0 : i32
    return %c0_i32, %c0_i32_0 : i32, i32
  }
  func.func @transform_8(%arg0: i32) -> (i32, i32) {
    %c0_i32 = arith.constant 0 : i32
    %c0_i32_0 = arith.constant 0 : i32
    %c0_i32_1 = arith.constant 0 : i32
    return %c0_i32, %c0_i32_0 : i32, i32
  }
  func.func @transform_9(%arg0: i32) -> (i32, i32) {
    %c0_i32 = arith.constant 0 : i32
    %c0_i32_0 = arith.constant 0 : i32
    return %arg0, %c0_i32 : i32, i32
  }
}

</mosaic_0001>

<bundles_post_ra>
// kernel: densenet_forward.1
= control target key start
LH: loop header
LB: loop body
LE: loop exit
PB: predicated region body
PF: predicated region fallthrough
CT: control target
= control target key end

     0   :  { %v389_v0 = vmov 0.0   ;;  %vm390_vm0 = vmmov 0   ;;  %vm51_vm1 = vcmask 130048   ;;  %vm138_vm2 = vcmask 523264   ;;  %s493_s1 = inlined_call_operand.vmem [shape: bf16[16,64], index: 1, kind: input, shape index: {}]   ;;  %s494_s0 = inlined_call_operand.vmem [shape: f32[16,16], index: 0, kind: input, shape index: {}]   ;;  %s495_s3 = inlined_call_operand.vmem [shape: bf16[64,32], index: 3, kind: input, shape index: {}]   ;;  %s496_s2 = inlined_call_operand.vmem [shape: f32[1,64], index: 2, kind: input, shape index: {}]   ;;  %s497_s5 = inlined_call_operand.vmem [shape: bf16[32,8], index: 5, kind: input, shape index: {}]   ;;  %s498_s4 = inlined_call_operand.vmem [shape: f32[1,32], index: 4, kind: input, shape index: {}]   ;;  %s499_s7 = inlined_call_operand.vmem [shape: bf16[8,128], index: 7, kind: input, shape index: {}]   ;;  %s500_s6 = inlined_call_operand.vmem [shape: f32[1,8], index: 6, kind: input, shape index: {}]   ;;  %s501_s8 = inlined_call_operand.vmem [shape: f32[1,128], index: 8, kind: input, shape index: {}]   ;;  %s502_s9 = inlined_call_operand.vmem [shape: f32[16,3], index: 9, kind: output, shape index: {}]  }
   0x1   :  { %348 = vmatprep.subr.bf16.mxu0 %v389_v0  ;;  %v382_v1 = vld [vmem:[%s493_s1] sm:$0xff]   ;;  %350 = vmatprep.mubr.msk.bf16.mxu0 %vm390_vm0, %v389_v0  ;;  %v34_v3 = vld [vmem:[%s494_s0 + $0x8] sm:$0xff]  ;;  %v385_v7 = vld [vmem:[%s495_s3 + $0x10] sm:$0xff]   ;;  %vm209_vm3 = vcmask 261120   ;;  %vm269_vm4 = vcmask 1043456   ;;  %vm265_vm5 = vcmask 64512  }
   0x2   :  { %v33_v2 = vld [vmem:[%s494_s0] sm:$0xff]  ;;  %354 = vmatprep.subr.bf16.mxu1 %v389_v0  ;;  %362 = vmatprep.mubr.msk.bf16.mxu1 %vm390_vm0, %v389_v0  ;;  %v384_v6 = vld [vmem:[%s495_s3 + $0x8] sm:$0xff]   ;;  %v386_v8 = vld [vmem:[%s495_s3 + $0x18] sm:$0xff]   ;;  %vm314_vm6 = vcmask 23552  }
   0x3   :  { %349 = vmatpush3.bf16.msra.mxu0 %v382_v1  ;;  %v35_v4 = vpack.c.bf16 %v34_v3, %v33_v2  ;;  %v383_v5 = vld [vmem:[%s495_s3] sm:$0xff]   ;;  %v388_v20 = vld [vmem:[%s497_s5 + $0x8] sm:$0xff]  }
   0x4   :  { %366 = vmatprep.subr.bf16.mxu0 %v389_v0  ;;  %355 = vmatpush3.bf16.msra.mxu1 %v383_v5  ;;  %v321_v9 = vld [vmem:[%s496_s2] ss:$0 sm:$0xff] }
   0x5   :  { %356 = vmatprep.subr.bf16.mxu1 %v389_v0  ;;  %v387_v19 = vld [vmem:[%s497_s5] sm:$0xff]  }
   0x6   :  { %351 = vmatmul.mubr.msk.bf16.vlgmr.msra.gmra.mrb[0].mxu0 %vm51_vm1, %v35_v4  ;;  %v324_v21 = vld [vmem:[%s498_s4] ss:$0 sm:$0xff] }
   0x7   :  { %370 = vmatprep.mubr.msk.bf16.mxu0 %vm390_vm0, %v389_v0  ;;  %367 = vmatpush3.bf16.msra.mxu0 %v387_v19  ;;  %v257_v31 = vld [vmem:[%s499_s7] sm:$0xf] }
   0x8   :  { %357 = vmatpush3.bf16.msra.mxu1 %v384_v6  ;;  %368 = vmatprep.subr.bf16.mxu0 %v389_v0  ;;  %v271_v32 = vsel %vm269_vm4, %v257_v31, 0  ;;  %v330_v33 = vld [vmem:[%s500_s6] ss:$0 sm:$0xff] }
   0x9   :  { %358 = vmatprep.subr.bf16.mxu1 %v389_v0  ;;  %v334_v43 = vld [vmem:[%s501_s8] ss:$0 sm:$0xff] }
   0xb   :  { %369 = vmatpush3.bf16.msra.mxu0 %v388_v20 }
   0xc   :  { %359 = vmatpush3.bf16.msra.mxu1 %v385_v7  ;;  %374 = vmatprep.subr.bf16.mxu0 %v389_v0 }
   0xd   :  { %360 = vmatprep.subr.bf16.mxu1 %v389_v0 }
  0x10   :  { %361 = vmatpush3.bf16.msra.mxu1 %v386_v8 }
  0xd9   :  { %v89_v10 = vpop.f32.mrb[0].mxu0 }
  0xda   :  { %v90_v11 = vadd.f32 %v321_v9, %v89_v10  ;;  %v352_v12 = vpop.f32.mrb[1].mxu0 }
  0xdb   :  { %v92_v13 = vpop.f32.mrb[2].mxu0 }
  0xdc   :  { %v93_v14 = vadd.f32 %v321_v9, %v92_v13  ;;  %v353_v15 = vpop.f32.mrb[3].mxu0  ;;  %v96_v16 = vmax.f32 %v90_v11, 0.0 }
  0xde   :  { %v97_v17 = vmax.f32 %v93_v14, 0.0 }
  0xe0   :  { %v98_v18 = vpack.c.bf16 %v97_v17, %v96_v16 }
  0xe2   :  { %363 = vmatmul.mubr.msk.bf16.vlgmr.msra.gmra.mrb[0].mxu1 %vm138_vm2, %v98_v18 }
 0x1b5   :  { %v176_v22 = vpop.f32.mrb[0].mxu1 }
 0x1b6   :  { %v177_v23 = vadd.f32 %v324_v21, %v176_v22  ;;  %v364_v24 = vpop.f32.mrb[1].mxu1 }
 0x1b7   :  { %v179_v25 = vpop.f32.mrb[2].mxu1 }
 0x1b8   :  { %v180_v26 = vadd.f32 %v324_v21, %v179_v25  ;;  %v365_v27 = vpop.f32.mrb[3].mxu1  ;;  %v183_v28 = vmax.f32 %v177_v23, 0.0 }
 0x1ba   :  { %v184_v29 = vmax.f32 %v180_v26, 0.0 }
 0x1bc   :  { %v185_v30 = vpack.c.bf16 %v184_v29, %v183_v28 }
 0x1be   :  { %371 = vmatmul.mubr.msk.bf16.vlgmr.msra.gmra.mrb[4].mxu0 %vm209_vm3, %v185_v30 }
 0x1bf   :  { %376 = vmatprep.mubr.msk.bf16.mxu0 %vm390_vm0, %v389_v0  ;;  %375 = vmatpush3.bf16.msra.mxu0 %v271_v32 }
 0x291   :  { %v247_v34 = vpop.f32.mrb[4].mxu0 }
 0x292   :  { %v248_v35 = vadd.f32 %v330_v33, %v247_v34  ;;  %v372_v36 = vpop.f32.mrb[5].mxu0 }
 0x293   :  { %v250_v37 = vpop.f32.mrb[6].mxu0 }
 0x294   :  { %v251_v38 = vadd.f32 %v330_v33, %v250_v37  ;;  %v373_v39 = vpop.f32.mrb[7].mxu0  ;;  %v254_v40 = vmax.f32 %v248_v35, 0.0 }
 0x296   :  { %v255_v41 = vmax.f32 %v251_v38, 0.0 }
 0x298   :  { %v256_v42 = vpack.c.bf16 %v255_v41, %v254_v40 }
 0x29a   :  { %377 = vmatmul.mubr.msk.bf16.vlgmr.msra.gmra.mrb[8].mxu0 %vm265_vm5, %v256_v42 }
 0x36d   :  { %v307_v44 = vpop.f32.mrb[8].mxu0 }
 0x36e   :  { %v308_v45 = vadd.f32 %v334_v43, %v307_v44  ;;  %v378_v46 = vpop.f32.mrb[9].mxu0 }
 0x36f   :  { %v310_v47 = vpop.f32.mrb[10].mxu0 }
 0x370   :  { %315 = vst.msk [vmem:[%s502_s9] sm:$0xff] %vm314_vm6, %v308_v45  ;;  %v311_v48 = vadd.f32 %v334_v43, %v310_v47  ;;  %v379_v49 = vpop.f32.mrb[11].mxu0 }
 0x372   :  { %316 = vst.msk [vmem:[%s502_s9 + $0x8] sm:$0xff] %vm314_vm6, %v311_v48 }

</bundles_post_ra>
